<compile_context>
chip_gen: v7x
topology: tpu7x:2x2x1
jax: 0.10.0
libtpu: 0.0.40
codegen_flags: <defaults>
</compile_context>

<pallas_src>
import jax
import jax.numpy as jnp
from jax.experimental import pallas as pl
from jax.experimental.pallas import tpu as pltpu

GAMMA = 4.0      # kernel specializes gamma == 4 (two squarings); module default
ALPHA = 0.25
EPSILON = 1e-9

LANES = 128
MAX_TILE_ROWS = 2048   # (2048,128) f32 block = 1 MiB per input
NUM_CORES = 2          # leading "parallel" grid axis (feeds v7x's 2 TensorCores)


def _cdiv(a, b):
    return (a + b - 1) // b


def _round_up(x, m):
    return ((x + m - 1) // m) * m


def _binary_focal_loss_kernel(x_ref, t_ref, out_ref):
    # Zero this core's accumulator block at the first reduction step.
    @pl.when(pl.program_id(1) == 0)
    def _init():
        out_ref[...] = jnp.zeros_like(out_ref)

    p = x_ref[...].astype(jnp.float32)   # (TILE_ROWS, 128) probabilities in (0,1)
    t = t_ref[...].astype(jnp.float32)   # (TILE_ROWS, 128) binary labels {0,1}

    # Binary target => exactly one of the two focal terms is nonzero per element:
    #   t==1: -alpha     * (1-p)^4 * log(p     + eps)
    #   t==0: -(1-alpha) * p^4     * log(1 - p + eps)
    # Padded elements (p=0, t=0) give q=0 -> contribute exactly 0.
    is_pos = t > 0.5
    s = jnp.where(is_pos, p, 1.0 - p)
    coef = jnp.where(is_pos, ALPHA, 1.0 - ALPHA)
    q = 1.0 - s
    q2 = q * q                                   # pow(., 4) via two squarings (VALU)
    loss = (-coef) * (q2 * q2) * jnp.log(s + EPSILON)   # one EUP log per element

    # Per-lane partial sums: (TILE_ROWS,128) -> (8,128) with pure vreg adds
    # (no cross-lane XLU work inside the pipelined loop).
    tile_rows = loss.shape[0]
    partial = loss.reshape(tile_rows // 8, 8, LANES).sum(axis=0)
    out_ref[...] += partial


@jax.jit
def binary_focal_loss(logits, target):
    """logits, target: shape [batch_size]; logits are probabilities in (0, 1).

    Returns the scalar mean binary focal loss (gamma=4, alpha=0.25, eps=1e-9),
    matching BinaryFocalLoss.forward for binary (0/1) targets.
    """
    assert logits.shape == target.shape and logits.ndim == 1
    n = logits.shape[0]

    rows = _cdiv(n, LANES)
    tile_rows = min(MAX_TILE_ROWS, _round_up(_cdiv(rows, NUM_CORES), 8))
    num_tiles = _cdiv(rows, NUM_CORES * tile_rows)
    rows_pad = NUM_CORES * num_tiles * tile_rows
    total = rows_pad * LANES

    # Keep the model dtype on the HBM->VMEM wire; pad with (p=0, t=0) == zero loss.
    x = jnp.pad(logits, (0, total - n)).reshape(rows_pad, LANES)
    t = jnp.pad(target.astype(logits.dtype), (0, total - n)).reshape(rows_pad, LANES)

    in_map = lambda c, i: (c * num_tiles + i, 0)

    out = pl.pallas_call(
        _binary_focal_loss_kernel,
        out_shape=jax.ShapeDtypeStruct((NUM_CORES * 8, LANES), jnp.float32),
        grid_spec=pltpu.PrefetchScalarGridSpec(
            num_scalar_prefetch=0,
            grid=(NUM_CORES, num_tiles),
            in_specs=[
                pl.BlockSpec((tile_rows, LANES), in_map),
                pl.BlockSpec((tile_rows, LANES), in_map),
            ],
            out_specs=pl.BlockSpec((8, LANES), lambda c, i: (c, 0)),
        ),
        compiler_params=pltpu.CompilerParams(
            dimension_semantics=("parallel", "arbitrary"),
            vmem_limit_bytes=32 * 1024 * 1024,
        ),
        cost_estimate=pl.CostEstimate(
            flops=8 * total,
            transcendentals=total,
            bytes_accessed=2 * total * x.dtype.itemsize + NUM_CORES * 8 * LANES * 4,
        ),
    )(x, t)

    # Tiny final reduction of the (16,128) partials; divide by the TRUE batch size.
    return jnp.sum(out) / n


if __name__ == "__main__":
    key = jax.random.PRNGKey(0)
    k1, k2, k3, k4 = jax.random.split(key, 4)

    def reference(p, t):
        # Literal translation of the PyTorch forward.
        return jnp.mean(
            -ALPHA * t * jnp.power(1.0 - p, GAMMA) * jnp.log(p + EPSILON)
            - (1.0 - ALPHA) * (1.0 - t) * jnp.power(p, GAMMA)
            * jnp.log(1.0 - p + EPSILON)
        )

    # Small case (single tile per core, heavy padding).
    batch_size = 8
    logits = jax.nn.sigmoid(jax.random.normal(k1, (batch_size,), jnp.float32))
    target = jax.random.bernoulli(k2, 0.5, (batch_size,)).astype(jnp.float32)
    loss = binary_focal_loss(logits, target)
    jax.block_until_ready(loss)
    ref = reference(logits, target)
    assert jnp.allclose(loss, ref, rtol=1e-5, atol=1e-6), (loss, ref)

    # Larger case exercising the multi-tile accumulator + 2-way core split + padding.
    batch_size2 = 600_001
    logits2 = jax.nn.sigmoid(jax.random.normal(k3, (batch_size2,), jnp.float32))
    target2 = jax.random.bernoulli(k4, 0.5, (batch_size2,)).astype(jnp.float32)
    loss2 = binary_focal_loss(logits2, target2)
    jax.block_until_ready(loss2)
    ref2 = reference(logits2, target2)
    assert jnp.allclose(loss2, ref2, rtol=5e-4, atol=1e-6), (loss2, ref2)

    print("KERNEL_OK")
</pallas_src>

<mosaic_0001>
module attributes {stable_mosaic.version = 11 : i64} {
  func.func @_binary_focal_loss_kernel(%arg0: i32, %arg1: i32, %arg2: memref<8x128xf32, #tpu.memory_space<vmem>>, %arg3: memref<8x128xf32, #tpu.memory_space<vmem>>, %arg4: memref<8x128xf32, #tpu.memory_space<vmem>>) attributes {dimension_semantics = [#tpu.dimension_semantics<parallel>, #tpu.dimension_semantics<arbitrary>], iteration_bounds = array<i64: 2, 1>, scalar_prefetch = 0 : i64, scratch_operands = 0 : i64, tpu.core_type = #tpu.core_type<tc>, window_params = [{transform_indices = @transform_0, window_bounds = array<i64: 8, 128>}, {transform_indices = @transform_1, window_bounds = array<i64: 8, 128>}, {transform_indices = @transform_2, window_bounds = array<i64: 8, 128>}]} {
    %c0_i32 = arith.constant 0 : i32
    %0 = arith.cmpi eq, %arg1, %c0_i32 : i32
    %1 = arith.extui %0 : i1 to i32
    %c0_i32_0 = arith.constant 0 : i32
    %2 = arith.cmpi ne, %1, %c0_i32_0 : i32
    scf.if %2 {
      %cst_15 = arith.constant 0.000000e+00 : f32
      %29 = vector.broadcast %cst_15 : f32 to vector<8x128xf32>
      %c0_16 = arith.constant 0 : index
      %c0_17 = arith.constant 0 : index
      %30 = vector.load %arg4[%c0_16, %c0_17] : memref<8x128xf32, #tpu.memory_space<vmem>>, vector<8x128xf32>
      tpu.vector_store %arg4[%c0_16, %c0_17], %29 {strides = array<i32>} : memref<8x128xf32, #tpu.memory_space<vmem>>, vector<8x128xf32>,
    } else {
    }
    %c0 = arith.constant 0 : index
    %c0_1 = arith.constant 0 : index
    %3 = vector.load %arg2[%c0, %c0_1] : memref<8x128xf32, #tpu.memory_space<vmem>>, vector<8x128xf32>
    %c0_2 = arith.constant 0 : index
    %c0_3 = arith.constant 0 : index
    %4 = vector.load %arg3[%c0_2, %c0_3] : memref<8x128xf32, #tpu.memory_space<vmem>>, vector<8x128xf32>
    %cst = arith.constant 5.000000e-01 : f32
    %5 = vector.broadcast %cst : f32 to vector<8x128xf32>
    %6 = arith.cmpf ogt, %4, %5 : vector<8x128xf32>
    %cst_4 = arith.constant 1.000000e+00 : f32
    %7 = vector.broadcast %cst_4 : f32 to vector<8x128xf32>
    %8 = arith.subf %7, %3 : vector<8x128xf32>
    %9 = arith.select %6, %3, %8 : vector<8x128xi1>, vector<8x128xf32>
    %cst_5 = arith.constant 2.500000e-01 : f32
    %cst_6 = arith.constant 7.500000e-01 : f32
    %10 = vector.broadcast %cst_5 : f32 to vector<8x128xf32>
    %11 = vector.broadcast %cst_6 : f32 to vector<8x128xf32>
    %12 = arith.select %6, %10, %11 : vector<8x128xi1>, vector<8x128xf32>
    %cst_7 = arith.constant 1.000000e+00 : f32
    %13 = vector.broadcast %cst_7 : f32 to vector<8x128xf32>
    %14 = arith.subf %13, %9 : vector<8x128xf32>
    %15 = arith.mulf %14, %14 : vector<8x128xf32>
    %cst_8 = arith.constant 0.000000e+00 : f32
    %16 = vector.broadcast %cst_8 : f32 to vector<8x128xf32>
    %17 = arith.subf %16, %12 : vector<8x128xf32>
    %18 = arith.mulf %15, %15 : vector<8x128xf32>
    %19 = arith.mulf %17, %18 : vector<8x128xf32>
    %cst_9 = arith.constant 9.99999971E-10 : f32
    %20 = vector.broadcast %cst_9 : f32 to vector<8x128xf32>
    %21 = arith.addf %9, %20 : vector<8x128xf32>
    %22 = math.log %21 : vector<8x128xf32>
    %23 = arith.mulf %19, %22 : vector<8x128xf32>
    %24 = vector.shape_cast %23 : vector<8x128xf32> to vector<1x8x128xf32>
    %cst_10 = arith.constant dense<0.000000e+00> : vector<8x128xf32>
    %25 = vector.multi_reduction <add>, %24, %cst_10 [0] : vector<1x8x128xf32> to vector<8x128xf32>
    %c0_11 = arith.constant 0 : index
    %c0_12 = arith.constant 0 : index
    %26 = vector.load %arg4[%c0_11, %c0_12] : memref<8x128xf32, #tpu.memory_space<vmem>>, vector<8x128xf32>
    %27 = arith.addf %26, %25 : vector<8x128xf32>
    %c0_13 = arith.constant 0 : index
    %c0_14 = arith.constant 0 : index
    %28 = vector.load %arg4[%c0_13, %c0_14] : memref<8x128xf32, #tpu.memory_space<vmem>>, vector<8x128xf32>
    tpu.vector_store %arg4[%c0_13, %c0_14], %27 {strides = array<i32>} : memref<8x128xf32, #tpu.memory_space<vmem>>, vector<8x128xf32>,
    return
  }
  func.func @transform_0(%arg0: i32, %arg1: i32) -> (i32, i32) {
    %c1_i32 = arith.constant 1 : i32
    %0 = arith.muli %arg0, %c1_i32 : i32
    %1 = arith.addi %0, %arg1 : i32
    %c0_i32 = arith.constant 0 : i32
    %c0_i32_0 = arith.constant 0 : i32
    return %1, %c0_i32 : i32, i32
  }
  func.func @transform_1(%arg0: i32, %arg1: i32) -> (i32, i32) {
    %c1_i32 = arith.constant 1 : i32
    %0 = arith.muli %arg0, %c1_i32 : i32
    %1 = arith.addi %0, %arg1 : i32
    %c0_i32 = arith.constant 0 : i32
    %c0_i32_0 = arith.constant 0 : i32
    return %1, %c0_i32 : i32, i32
  }
  func.func @transform_2(%arg0: i32, %arg1: i32) -> (i32, i32) {
    %c0_i32 = arith.constant 0 : i32
    %c0_i32_0 = arith.constant 0 : i32
    return %arg0, %c0_i32 : i32, i32
  }
}

</mosaic_0001>

<bundles_post_ra>
// kernel: binary_focal_loss.1
= control target key start
LH: loop header
LB: loop body
LE: loop exit
PB: predicated region body
PF: predicated region fallthrough
CT: control target
= control target key end

     0   :  { %s357_s9 = smov 0   ;;  %s359_s10 = smov 0   ;;  %s393_s0 = inlined_call_operand.vmem [shape: f32[16,128], index: 0, kind: input, shape index: {}]   ;;  %s394_s1 = inlined_call_operand.vmem [shape: f32[16,128], index: 1, kind: input, shape index: {}]   ;;  %s395_s2 = inlined_call_operand.vmem [shape: f32[16,128], index: 2, kind: output, shape index: {}]  }
   0x1   :  { %s361_s11 = smov 0  }
   0x2 LB: > { %s24_s12 = sadd.s32 1, %s335_s10  ;;  %p283_p0 = scmp.ge.s32.totalorder %s339_s11, 1  ;;  %s339_s11 = sphi %s361_s11, %s12_s11   ;;  %s335_s10 = sphi %s359_s10, %s397_s10   ;;  %s331_s9 = sphi %s357_s9, %s396_s9  }
   0x3   : > { %p26_p1 = scmp.ge.s32.totalorder %s24_s12, 2  ;;  %p140_p2 = scmp.lt.s32.totalorder %s339_s11, 3 }
   0x5   : > { %s399_s12 = smov (%p26_p1, %s24_s12), 0  ;;  %p141_p3 = pnand %p283_p0, %p140_p2 }
   0x6   : > { %p167_p4 = scmp.lt.s32.totalorder (!%p141_p3), %s331_s9, 1  ;;  %v341_v7 = vmov (!%p141_p3), 0.75  }
   0x7   : > { %144 = sbr.rel (%p141_p3) target bundleno = 39 (0x27), region = 28 }
   0xe   : > { %s401_s9 = smov (!%p167_p4, %s331_s9), 1 }
   0xf   : > { %s284_s13 = sshll.u32 %s401_s9, 3 }
  0x10   : > { %s170_s16 = scalar_lea.vmem %s393_s0, %s284_s13  ;;  %s176_s19 = scalar_lea.vmem %s394_s1, %s284_s13 }
  0x11   : > { %v187_v0 = vld [vmem:[%s170_s16] sm:$0xff]  ;;  %s181_s22 = scalar_lea.vmem %s395_s2, %s284_s13 }
  0x12   : > { %v188_v1 = vld [vmem:[%s176_s19] sm:$0xff]  ;;  %v190_v2 = vsub.f32 1.0, %v187_v0 }
  0x13   : > { %vm189_vm0 = vcmp.gt.f32.partialorder %v188_v1, 0.5 }
  0x14   : > { %v191_v3 = vsel %vm189_vm0, %v187_v0, %v190_v2  ;;  %v192_v8 = vsel %vm189_vm0, 0.25, %v341_v7 }
  0x15   : > { %v193_v4 = vsub.f32 1.0, %v191_v3  ;;  %v198_v5 = vadd.f32 1e-09, %v191_v3  ;;  %v195_v9 = vsub.f32 0.0, %v192_v8 }
  0x17   : > { %315 = vlog2.f32 %v198_v5  ;;  %v194_v6 = vmul.f32 %v193_v4, %v193_v4 }
  0x19   : > { %v196_v10 = vmul.f32 %v194_v6, %v194_v6 }
  0x1b   : > { %v197_v11 = vmul.f32 %v196_v10, %v195_v9 }
  0x21   : > { %v316_v12 = vpop.eup %315 }
  0x22   : > { %v200_v13 = vmul.f32 0.6931472, %v316_v12 }
  0x24   : > { %v201_v14 = vmul.f32 %v200_v13, %v197_v11 }
  0x26   : > { %205 = vst [vmem:[%s181_s22] sm:$0xff] %v201_v14 }
  0x27 PF: > { %s12_s11 = sadd.s32 1, %s339_s11   ;;  %s396_s9 = smov %s335_s10 }
  0x28   : > { %p9_p5 = scmp.ge.s32.totalorder %s12_s11, 4   ;;  %s397_s10 = smov %s399_s12 }
  0x2a   :  { %11 = sbr.rel (!%p9_p5) target bundleno = 2 (0x2), region = 65 }

</bundles_post_ra>
